<compile_context>
chip_gen: v5e
topology: v5e:2x2
jax: 0.10.0
libtpu: 0.0.40
codegen_flags: <defaults>
</compile_context>

<pallas_src>
import functools

import jax
import jax.numpy as jnp
from jax.experimental import pallas as pl
from jax.experimental.pallas import tpu as pltpu


_ACT_FNS = {
    "tanh": jnp.tanh,
    "relu": lambda x: jnp.maximum(x, 0.0),
    "softplus": jax.nn.softplus,
    "elu": jax.nn.elu,
    "square": lambda x: x * x,
    "identity": lambda x: x,
}


def _round_up(n, m):
    return ((n + m - 1) // m) * m


def _pad2(a, rows, cols):
    return jnp.pad(a, ((0, rows - a.shape[0]), (0, cols - a.shape[1])))


# ----------------------------------------------------------------------------
# Fused Pallas kernel: whole amortized MLP forward for one batch tile.
# refs = (x_ref, [per-layer w_ref, optional b_ref ...], o_ref[, acc_ref]).
# `chains` is a static tuple of chains; each chain is a tuple of (act_name, has_bias).
# Every chain starts from x; chain outputs are summed (highway skip connection).
# ----------------------------------------------------------------------------
def _fused_mlp_kernel(*refs, chains, multi_chain):
    x_ref = refs[0]
    if multi_chain:
        o_ref, acc_ref = refs[-2], refs[-1]
    else:
        o_ref, acc_ref = refs[-1], None
    compute_dtype = x_ref.dtype

    idx = 1
    for ci, chain in enumerate(chains):
        # Re-load x from VMEM at the start of every chain so it is not held live in vregs
        # across all layers (reduces register pressure / spills).
        h = x_ref[...]
        n_layers = len(chain)
        for li, (act_name, has_bias) in enumerate(chain):
            w_ref = refs[idx]
            idx += 1
            # MXU matmul with f32 accumulation; operands are in the compute dtype (bf16/f32).
            acc = jnp.dot(h, w_ref[...], preferred_element_type=jnp.float32)
            if has_bias:
                b_ref = refs[idx]
                idx += 1
                acc = acc + b_ref[...]            # (1, dout_pad) f32, broadcasts
            if li == n_layers - 1:
                h = _ACT_FNS[act_name](acc)       # last layer: keep f32 (identity act here)
            else:
                # Hidden activation in the compute dtype (bf16 EUP on v6e/v7x); the result
                # feeds the next matmul directly in the compute dtype.
                h = _ACT_FNS[act_name](acc.astype(compute_dtype))

        if acc_ref is None:
            o_ref[...] = h.astype(o_ref.dtype)
        else:
            if ci == 0:
                acc_ref[...] = h
            else:
                acc_ref[...] = acc_ref[...] + h

    if acc_ref is not None:
        o_ref[...] = acc_ref[...].astype(o_ref.dtype)


def fused_amortized_mlp_pallas(x, packed_chains, out_dim, din_pack, dout_pad, out_dtype):
    """x: [B, input_dim].  packed_chains: list of chains; each chain is a list of
    (W^T padded [din_p, dout_p] in the compute dtype, bias padded [1, dout_p] f32 or None,
    act_name).  All chains consume x; results are summed.  Returns [B, out_dim]."""
    B, din0 = x.shape
    compute_dtype = packed_chains[0][0][0].dtype

    xc = x.astype(compute_dtype)
    if din_pack != din0:
        # Tiny sublane-alignment pad only (to 8/16 columns), NOT a 128-multiple pad of x.
        xc = jnp.pad(xc, ((0, 0), (0, din_pack - din0)))

    # Batch tiling: single full-array block for small batches (no masking, no padding);
    # for large batches cap the tile at 512 rows and guarantee >=2 grid steps so v7x's two
    # TensorCores both get work on the 'parallel' axis.  The remainder block (if any) is
    # handled by the pl.cdiv grid — no wrapper-side batch padding.
    if B <= 256:
        tb = B
    else:
        tb = min(512, _round_up(pl.cdiv(B, 2), 8))
    grid = (pl.cdiv(B, tb),)

    inputs = [xc]
    in_specs = [pl.BlockSpec((tb, din_pack), lambda i: (i, 0))]
    chain_cfg = []
    for chain in packed_chains:
        layer_cfg = []
        for (w, b, act_name) in chain:
            inputs.append(w)
            # Constant index_map: the pipeliner copies the tile once and keeps it resident
            # in VMEM across the batch grid axis (no per-step re-DMA).
            in_specs.append(pl.BlockSpec(w.shape, lambda i: (0, 0)))
            if b is not None:
                inputs.append(b)
                in_specs.append(pl.BlockSpec(b.shape, lambda i: (0, 0)))
            layer_cfg.append((act_name, b is not None))
        chain_cfg.append(tuple(layer_cfg))

    multi_chain = len(packed_chains) > 1
    scratch_shapes = [pltpu.VMEM((tb, dout_pad), jnp.float32)] if multi_chain else []

    # Explicit VMEM budget derived from the actual resident footprint (double-buffered x/out,
    # resident weights/biases, highway accumulator) plus headroom.  Helps v7x's smaller
    # 64 MiB physical / 32 MiB default-scoped VMEM.
    bpe_c = compute_dtype.itemsize
    bpe_o = jnp.zeros((), out_dtype).dtype.itemsize
    footprint = 2 * tb * din_pack * bpe_c + 2 * tb * dout_pad * bpe_o
    for chain in packed_chains:
        for (w, b, _) in chain:
            footprint += 2 * w.shape[0] * w.shape[1] * w.dtype.itemsize
            if b is not None:
                footprint += 2 * 8 * b.shape[1] * b.dtype.itemsize
    if multi_chain:
        footprint += tb * dout_pad * 4
    vmem_limit = min(128 << 20, max(32 << 20, int(1.5 * footprint) + (2 << 20)))

    kernel = functools.partial(_fused_mlp_kernel, chains=tuple(chain_cfg),
                               multi_chain=multi_chain)
    out = pl.pallas_call(
        kernel,
        out_shape=jax.ShapeDtypeStruct((B, dout_pad), out_dtype),
        grid=grid,
        in_specs=in_specs,
        out_specs=pl.BlockSpec((tb, dout_pad), lambda i: (i, 0)),
        scratch_shapes=scratch_shapes,
        compiler_params=pltpu.CompilerParams(
            dimension_semantics=("parallel",),
            vmem_limit_bytes=vmem_limit),
    )(*inputs)

    if dout_pad != out_dim:
        out = out[:, :out_dim]
    return out


# ----------------------------------------------------------------------------
# Structure bookkeeping (mirrors AmortizableMLP.initialize_uv_structure, svd_mode='smart')
# ----------------------------------------------------------------------------
def _build_mlp_def(inputs, outputs, low_ranks, add_final_bias, nonlinearity):
    assert len(inputs) == len(outputs) == len(low_ranks)
    d = {
        "inputs": list(inputs),
        "outputs": list(outputs),
        "num_u_s": [],
        "num_v_s": [],
        "num_b_s": [],
        "smart_flags": [],
        "used_ranks": [],
        "activations": [],
    }
    num_params = 0
    for ind in range(len(inputs)):
        max_rank = min(inputs[ind], outputs[ind])
        used_rank = min(max_rank, low_ranks[ind]) if low_ranks[ind] > 0 else max_rank
        d["used_ranks"].append(used_rank)
        max_num_pars = inputs[ind] * outputs[ind]
        # svd_mode == 'smart'
        if used_rank * (inputs[ind] + outputs[ind]) < max_num_pars and low_ranks[ind] > 0:
            d["num_u_s"].append(used_rank * outputs[ind])
            d["num_v_s"].append(used_rank * inputs[ind])
            d["smart_flags"].append(0)
            num_params += used_rank * (inputs[ind] + outputs[ind])
        else:
            d["num_u_s"].append(inputs[ind] * outputs[ind])
            d["num_v_s"].append(0)
            d["smart_flags"].append(1)
            num_params += inputs[ind] * outputs[ind]
        if ind == len(inputs) - 1:
            d["activations"].append("identity")
            d["num_b_s"].append(outputs[ind] if add_final_bias else 0)
        else:
            d["activations"].append(nonlinearity)
            d["num_b_s"].append(outputs[ind])
        num_params += d["num_b_s"][-1]
    d["num_params"] = num_params
    return d


# ----------------------------------------------------------------------------
# Pure-JAX reference (mirrors torch apply_amortized_mlp with batched params) for validation.
# ----------------------------------------------------------------------------
def _apply_amortized_mlp_ref(mlp_def, x, params):
    hi = jax.lax.Precision.HIGHEST
    B = x.shape[0]
    prev = x
    for ind in range(len(mlp_def["outputs"])):
        nu = mlp_def["num_u_s"][ind]
        nv = mlp_def["num_v_s"][ind]
        nb = mlp_def["num_b_s"][ind]
        this_u, params = params[:, :nu], params[:, nu:]
        this_v, params = params[:, :nv], params[:, nv:]
        this_b, params = params[:, :nb], params[:, nb:]
        din = mlp_def["inputs"][ind]
        dout = mlp_def["outputs"][ind]
        rank = mlp_def["used_ranks"][ind]
        act = mlp_def["activations"][ind]
        if mlp_def["smart_flags"][ind]:
            W = this_u.reshape(B, dout, din)
            y = jnp.einsum("boi,bi->bo", W, prev, precision=hi)
        else:
            VT = this_v.reshape(B, rank, din)
            U = this_u.reshape(B, dout, rank)
            inter = jnp.einsum("bri,bi->br", VT, prev, precision=hi)
            y = jnp.einsum("bor,br->bo", U, inter, precision=hi)
        if nb > 0:
            y = y + this_b
        prev = _ACT_FNS[act](y)
    return prev, params


class AmortizableMLPPallas:
    """JAX/Pallas port of jammy_flows AmortizableMLP forward (svd_mode='smart', permanent
    parameters, 2-D inputs, highway_mode in {0, 1})."""

    def __init__(self, input_dim, hidden_dims, output_dim, highway_mode=0,
                 low_rank_approximations=0, nonlinearity="tanh",
                 compute_dtype=jnp.bfloat16):
        if isinstance(hidden_dims, str):
            hidden_dims = [] if hidden_dims == "" else [int(s) for s in hidden_dims.split("-")]
        elif isinstance(hidden_dims, int):
            hidden_dims = [hidden_dims]
        self.input_dim = input_dim
        self.output_dim = output_dim
        self.hidden_dims = list(hidden_dims)
        self.highway_mode = highway_mode
        self.nonlinearity = nonlinearity
        self.compute_dtype = jax.dtypes.canonicalize_dtype(compute_dtype)
        assert 0 <= highway_mode <= 1, "only highway_mode 0/1 implemented"

        if highway_mode == 0:
            num_matrices = len(self.hidden_dims) + 1
        else:
            num_matrices = len(self.hidden_dims) + 2

        if isinstance(low_rank_approximations, int):
            low_ranks = num_matrices * [low_rank_approximations]
        elif isinstance(low_rank_approximations, str):
            low_ranks = ([] if low_rank_approximations == ""
                         else [int(s) for s in low_rank_approximations.split("-")])
        else:
            low_ranks = list(low_rank_approximations)
        assert len(low_ranks) == num_matrices

        self.mlp_list = []
        self.linear_highway = None
        inputs = [input_dim] + self.hidden_dims
        outputs = self.hidden_dims + [output_dim]
        if highway_mode == 0:
            self.mlp_list.append(
                _build_mlp_def(inputs, outputs, low_ranks, True, nonlinearity))
        else:
            if len(self.hidden_dims) > 0:
                self.mlp_list.append(
                    _build_mlp_def(inputs, outputs, low_ranks[:-1], False, nonlinearity))
            self.linear_highway = _build_mlp_def(
                [input_dim], [output_dim], low_ranks[-1:], True, nonlinearity)

        self.num_amortization_params = sum(d["num_params"] for d in self.mlp_list)
        if self.linear_highway is not None:
            self.num_amortization_params += self.linear_highway["num_params"]

        # First-layer contraction dim only needs sublane packing alignment (8 f32 / 16 bf16),
        # not a 128-multiple; later layers use the 128-padded previous output width.
        din_align = 8 if self.compute_dtype.itemsize == 4 else 16
        self._din_pack = _round_up(input_dim, din_align)
        self._dout_pad = _round_up(output_dim, 128)
        self._packed_chains = None
        self._raw_params = None

    # ------------------------------------------------------------------ packing
    def _pack_chain(self, mlp_def, params_f32, offset):
        """Slice the flat parameter vector into padded, compute-dtype W^T blocks (+ f32 biases).
        Low-rank pairs are composed into a single W when the padded factored form is no cheaper."""
        layers = []
        for ind in range(len(mlp_def["outputs"])):
            nu = mlp_def["num_u_s"][ind]
            nv = mlp_def["num_v_s"][ind]
            nb = mlp_def["num_b_s"][ind]
            u = params_f32[offset:offset + nu]; offset += nu
            v = params_f32[offset:offset + nv]; offset += nv
            b = params_f32[offset:offset + nb]; offset += nb
            din = mlp_def["inputs"][ind]
            dout = mlp_def["outputs"][ind]
            rank = mlp_def["used_ranks"][ind]
            act = mlp_def["activations"][ind]

            first = (len(layers) == 0)
            din_p = self._din_pack if first else _round_up(din, 128)
            dout_p = _round_up(dout, 128)
            bias_p = _pad2(b.reshape(1, dout), 1, dout_p) if nb > 0 else None

            if mlp_def["smart_flags"][ind]:
                w_t = u.reshape(dout, din).T                       # [din, dout] == W^T
                layers.append((_pad2(w_t, din_p, dout_p).astype(self.compute_dtype),
                               bias_p, act))
            else:
                vt = v.reshape(rank, din)                          # V^T
                uu = u.reshape(dout, rank)                         # U
                rank_p = _round_up(rank, 128)
                composed_cost = din_p * dout_p
                factored_cost = din_p * rank_p + rank_p * dout_p
                if composed_cost <= factored_cost:
                    # Collapse: y = U (V^T x) == (U V^T) x, so W^T = V U^T (composed in f32).
                    w_t = jnp.dot(vt.T, uu.T, precision=jax.lax.Precision.HIGHEST)
                    layers.append((_pad2(w_t, din_p, dout_p).astype(self.compute_dtype),
                                   bias_p, act))
                else:
                    # Keep the factored form (cheaper for genuinely wide low-rank layers):
                    # x @ (V^T)^T, then @ U^T; bias/activation after the U multiply.
                    layers.append((_pad2(vt.T, din_p, rank_p).astype(self.compute_dtype),
                                   None, "identity"))
                    layers.append((_pad2(uu.T, rank_p, dout_p).astype(self.compute_dtype),
                                   bias_p, act))
        return layers, offset

    def set_parameters(self, u_v_b_pars):
        """Pack the flat (shared) parameter vector once: slice, compose low-rank pairs, pad,
        cast.  Repeated forward() calls reuse the packed blocks (no per-call param prologue)."""
        params = jnp.asarray(u_v_b_pars, dtype=jnp.float32).reshape(-1)
        assert params.shape[0] == self.num_amortization_params
        chains = []
        offset = 0
        for mlp_def in self.mlp_list:
            chain, offset = self._pack_chain(mlp_def, params, offset)
            chains.append(chain)
        if self.linear_highway is not None:
            chain, offset = self._pack_chain(self.linear_highway, params, offset)
            chains.append(chain)
        assert offset == self.num_amortization_params
        self._packed_chains = chains
        self._raw_params = u_v_b_pars
        return self

    # ------------------------------------------------------------------ forward
    def forward(self, x, u_v_b_pars=None):
        assert x.ndim == 2 and x.shape[1] == self.input_dim
        if u_v_b_pars is not None and u_v_b_pars is not self._raw_params:
            self.set_parameters(u_v_b_pars)
        assert self._packed_chains is not None, "call set_parameters(u_v_b_pars) first"
        return fused_amortized_mlp_pallas(
            x, self._packed_chains, self.output_dim,
            self._din_pack, self._dout_pad, out_dtype=x.dtype)

    # Pure-JAX reference mirroring the torch forward (validation only).
    def forward_reference(self, x, u_v_b_pars):
        B = x.shape[0]
        params = jnp.broadcast_to(
            u_v_b_pars.astype(jnp.float32).reshape(1, -1),
            (B, self.num_amortization_params))
        prev = 0.0
        if self.highway_mode > 0:
            nhp = self.linear_highway["num_params"]
            lin_params = params[:, -nhp:]
            params = params[:, :-nhp]
            lin_out, rest = _apply_amortized_mlp_ref(self.linear_highway, x, lin_params)
            assert rest.shape[1] == 0
            prev = lin_out
        if len(self.mlp_list) > 0:
            nonlinear, params = _apply_amortized_mlp_ref(self.mlp_list[0], x, params)
            prev = prev + nonlinear
        return prev


if __name__ == "__main__":
    key = jax.random.PRNGKey(0)
    kx, kp0, kp1, kp2 = jax.random.split(key, 4)

    B = 4
    input_dim, hidden_dims, output_dim = 8, [32, 16], 12
    x = jax.random.normal(kx, (B, input_dim), jnp.float32)

    configs = [
        # A: plain MLP, first matrix low-rank (rank 4, collapsed at pack time), rest full.
        dict(hidden=hidden_dims, highway=0, lowrank=[4, 0, 0], key=kp0),
        # B: highway_mode=1 (extra linear skip from input to output), full rank.
        dict(hidden=hidden_dims, highway=1, lowrank=0, key=kp1),
        # C: highway_mode=1 with no hidden layers (pure linear highway).
        dict(hidden=[], highway=1, lowrank=0, key=kp2),
    ]

    ok = True
    for cfg in configs:
        for compute_dtype, atol, rtol in ((jnp.float32, 5e-5, 5e-5),
                                          (jnp.bfloat16, 7.5e-2, 5e-2)):
            model = AmortizableMLPPallas(input_dim, cfg["hidden"], output_dim,
                                         highway_mode=cfg["highway"],
                                         low_rank_approximations=cfg["lowrank"],
                                         nonlinearity="tanh",
                                         compute_dtype=compute_dtype)
            uvb = 0.5 * jax.random.normal(
                cfg["key"], (1, model.num_amortization_params), jnp.float32)
            model.set_parameters(uvb)          # pack padded weights once
            y = jax.block_until_ready(model.forward(x))
            y_ref = model.forward_reference(x, uvb)
            assert y.shape == (B, output_dim)
            ok = ok and bool(jnp.allclose(y, y_ref, atol=atol, rtol=rtol))

    if ok:
        print("KERNEL_OK")
</pallas_src>

<mosaic_0001>
module attributes {stable_mosaic.version = 11 : i64} {
  func.func @_fused_mlp_kernel(%arg0: i32, %arg1: memref<4x8xf32, #tpu.memory_space<vmem>>, %arg2: memref<8x128xf32, #tpu.memory_space<vmem>>, %arg3: memref<1x128xf32, #tpu.memory_space<vmem>>, %arg4: memref<128x128xf32, #tpu.memory_space<vmem>>, %arg5: memref<1x128xf32, #tpu.memory_space<vmem>>, %arg6: memref<128x128xf32, #tpu.memory_space<vmem>>, %arg7: memref<1x128xf32, #tpu.memory_space<vmem>>, %arg8: memref<4x128xf32, #tpu.memory_space<vmem>>) attributes {dimension_semantics = [#tpu.dimension_semantics<parallel>], iteration_bounds = array<i64: 1>, scalar_prefetch = 0 : i64, scratch_operands = 0 : i64, tpu.core_type = #tpu.core_type<tc>, window_params = [{transform_indices = @transform_0, window_bounds = array<i64: 4, 8>}, {pipeline_mode = #tpu.pipeline_mode<synchronous>, transform_indices = @transform_1, window_bounds = array<i64: 8, 128>}, {pipeline_mode = #tpu.pipeline_mode<synchronous>, transform_indices = @transform_2, window_bounds = array<i64: 1, 128>}, {pipeline_mode = #tpu.pipeline_mode<synchronous>, transform_indices = @transform_3, window_bounds = array<i64: 128, 128>}, {pipeline_mode = #tpu.pipeline_mode<synchronous>, transform_indices = @transform_4, window_bounds = array<i64: 1, 128>}, {pipeline_mode = #tpu.pipeline_mode<synchronous>, transform_indices = @transform_5, window_bounds = array<i64: 128, 128>}, {pipeline_mode = #tpu.pipeline_mode<synchronous>, transform_indices = @transform_6, window_bounds = array<i64: 1, 128>}, {transform_indices = @transform_7, window_bounds = array<i64: 4, 128>}]} {
    %c0 = arith.constant 0 : index
    %c0_0 = arith.constant 0 : index
    %0 = vector.load %arg1[%c0, %c0_0] : memref<4x8xf32, #tpu.memory_space<vmem>>, vector<4x8xf32>
    %c0_1 = arith.constant 0 : index
    %c0_2 = arith.constant 0 : index
    %1 = vector.load %arg2[%c0_1, %c0_2] : memref<8x128xf32, #tpu.memory_space<vmem>>, vector<8x128xf32>
    %cst = arith.constant dense<0.000000e+00> : vector<4x128xf32>
    %2 = tpu.matmul %0, %1, %cst {dimension_numbers = #tpu.dot_dimension_numbers<[1], [0], [0], [1], [0, 0, 1, 1], [], []>} : vector<4x8xf32>, vector<8x128xf32>, vector<4x128xf32> -> vector<4x128xf32>
    %c0_3 = arith.constant 0 : index
    %c0_4 = arith.constant 0 : index
    %3 = vector.load %arg3[%c0_3, %c0_4] : memref<1x128xf32, #tpu.memory_space<vmem>>, vector<1x128xf32>
    %4 = vector.broadcast %3 : vector<1x128xf32> to vector<4x128xf32>
    %5 = arith.addf %2, %4 : vector<4x128xf32>
    %6 = math.tanh %5 : vector<4x128xf32>
    %c0_5 = arith.constant 0 : index
    %c0_6 = arith.constant 0 : index
    %7 = vector.load %arg4[%c0_5, %c0_6] : memref<128x128xf32, #tpu.memory_space<vmem>>, vector<128x128xf32>
    %cst_7 = arith.constant dense<0.000000e+00> : vector<4x128xf32>
    %8 = tpu.matmul %6, %7, %cst_7 {dimension_numbers = #tpu.dot_dimension_numbers<[1], [0], [0], [1], [0, 0, 1, 1], [], []>} : vector<4x128xf32>, vector<128x128xf32>, vector<4x128xf32> -> vector<4x128xf32>
    %c0_8 = arith.constant 0 : index
    %c0_9 = arith.constant 0 : index
    %9 = vector.load %arg5[%c0_8, %c0_9] : memref<1x128xf32, #tpu.memory_space<vmem>>, vector<1x128xf32>
    %10 = vector.broadcast %9 : vector<1x128xf32> to vector<4x128xf32>
    %11 = arith.addf %8, %10 : vector<4x128xf32>
    %12 = math.tanh %11 : vector<4x128xf32>
    %c0_10 = arith.constant 0 : index
    %c0_11 = arith.constant 0 : index
    %13 = vector.load %arg6[%c0_10, %c0_11] : memref<128x128xf32, #tpu.memory_space<vmem>>, vector<128x128xf32>
    %cst_12 = arith.constant dense<0.000000e+00> : vector<4x128xf32>
    %14 = tpu.matmul %12, %13, %cst_12 {dimension_numbers = #tpu.dot_dimension_numbers<[1], [0], [0], [1], [0, 0, 1, 1], [], []>} : vector<4x128xf32>, vector<128x128xf32>, vector<4x128xf32> -> vector<4x128xf32>
    %c0_13 = arith.constant 0 : index
    %c0_14 = arith.constant 0 : index
    %15 = vector.load %arg7[%c0_13, %c0_14] : memref<1x128xf32, #tpu.memory_space<vmem>>, vector<1x128xf32>
    %16 = vector.broadcast %15 : vector<1x128xf32> to vector<4x128xf32>
    %17 = arith.addf %14, %16 : vector<4x128xf32>
    %c0_15 = arith.constant 0 : index
    %c0_16 = arith.constant 0 : index
    %18 = vector.load %arg8[%c0_15, %c0_16] : memref<4x128xf32, #tpu.memory_space<vmem>>, vector<4x128xf32>
    tpu.vector_store %arg8[%c0_15, %c0_16], %17 {strides = array<i32>} : memref<4x128xf32, #tpu.memory_space<vmem>>, vector<4x128xf32>,
    return
  }
  func.func @transform_0(%arg0: i32) -> (i32, i32) {
    %c0_i32 = arith.constant 0 : i32
    %c0_i32_0 = arith.constant 0 : i32
    return %arg0, %c0_i32 : i32, i32
  }
  func.func @transform_1(%arg0: i32) -> (i32, i32) {
    %c0_i32 = arith.constant 0 : i32
    %c0_i32_0 = arith.constant 0 : i32
    %c0_i32_1 = arith.constant 0 : i32
    return %c0_i32, %c0_i32_0 : i32, i32
  }
  func.func @transform_2(%arg0: i32) -> (i32, i32) {
    %c0_i32 = arith.constant 0 : i32
    %c0_i32_0 = arith.constant 0 : i32
    %c0_i32_1 = arith.constant 0 : i32
    return %c0_i32, %c0_i32_0 : i32, i32
  }
  func.func @transform_3(%arg0: i32) -> (i32, i32) {
    %c0_i32 = arith.constant 0 : i32
    %c0_i32_0 = arith.constant 0 : i32
    %c0_i32_1 = arith.constant 0 : i32
    return %c0_i32, %c0_i32_0 : i32, i32
  }
  func.func @transform_4(%arg0: i32) -> (i32, i32) {
    %c0_i32 = arith.constant 0 : i32
    %c0_i32_0 = arith.constant 0 : i32
    %c0_i32_1 = arith.constant 0 : i32
    return %c0_i32, %c0_i32_0 : i32, i32
  }
  func.func @transform_5(%arg0: i32) -> (i32, i32) {
    %c0_i32 = arith.constant 0 : i32
    %c0_i32_0 = arith.constant 0 : i32
    %c0_i32_1 = arith.constant 0 : i32
    return %c0_i32, %c0_i32_0 : i32, i32
  }
  func.func @transform_6(%arg0: i32) -> (i32, i32) {
    %c0_i32 = arith.constant 0 : i32
    %c0_i32_0 = arith.constant 0 : i32
    %c0_i32_1 = arith.constant 0 : i32
    return %c0_i32, %c0_i32_0 : i32, i32
  }
  func.func @transform_7(%arg0: i32) -> (i32, i32) {
    %c0_i32 = arith.constant 0 : i32
    %c0_i32_0 = arith.constant 0 : i32
    return %arg0, %c0_i32 : i32, i32
  }
}

</mosaic_0001>

<bundles_post_ra>
// kernel: tpu_custom_call.1
= control target key start
LH: loop header
LB: loop body
LE: loop exit
PB: predicated region body
PF: predicated region fallthrough
CT: control target
= control target key end

     0   :  { %12 = vsyncpa [#allocation3], 0  ;;  %s432_s0 = inlined_call_operand.hbm [shape: f32[4,8], index: 0, kind: input, shape index: {}]   ;;  %s433_s1 = inlined_call_operand.hbm [shape: f32[8,128], index: 1, kind: input, shape index: {}]   ;;  %s434_s2 = inlined_call_operand.vmem [shape: f32[1,128], index: 2, kind: input, shape index: {}]   ;;  %s435_s3 = inlined_call_operand.hbm [shape: f32[128,128], index: 3, kind: input, shape index: {}]   ;;  %s436_s4 = inlined_call_operand.vmem [shape: f32[1,128], index: 4, kind: input, shape index: {}]   ;;  %s437_s5 = inlined_call_operand.hbm [shape: f32[128,128], index: 5, kind: input, shape index: {}]   ;;  %s438_s6 = inlined_call_operand.vmem [shape: f32[1,128], index: 6, kind: input, shape index: {}]   ;;  %s439_s7 = inlined_call_operand.hbm [shape: f32[4,128], index: 7, kind: output, shape index: {}]  }
   0x1   :  { %13 = vsyncpa [#allocation6], 0 }
   0x2   :  { %14 = vsyncpa [#allocation9], 0  ;;  %s32_s26 = sshll.u32 %s433_s1, 4  ;;  %s33_s26 = int_to_ptr.hbm [resolvable:$true] %s32_s26 }
   0x3   :  { %15 = vsyncpa [#allocation4], 0  ;;  %s361_s27 = smov [#allocation5]   ;;  %s21_s8 = sshll.u32 %s432_s0, 4  ;;  %s22_s8 = int_to_ptr.hbm [resolvable:$true] %s21_s8 }
   0x4   :  { %s34_s28 = sshll.u32 %s361_s27, 4  ;;  %s362_s9 = smov [#allocation2]   ;;  %s35_s28 = int_to_ptr.vmem [resolvable:$true] %s34_s28 }
   0x5   :  { %37 = dma.hbm_to_vmem [thread:$0]  %s33_s26, 128, %s35_s28, [#allocation6]  }
   0x6   :  { %s23_s10 = sshll.u32 %s362_s9, 4  ;;  %s44_s13 = sshll.u32 %s435_s3, 4  ;;  %s24_s10 = int_to_ptr.vmem [resolvable:$true] %s23_s10  ;;  %s45_s13 = int_to_ptr.hbm [resolvable:$true] %s44_s13 }
   0x7   :  { %26 = dma.hbm_to_vmem [thread:$0]  %s22_s8, 64, %s24_s10, [#allocation3]  }
   0x8   :  { %s363_s1 = smov [#allocation7]   ;;  %s59_s17 = sshll.u32 %s437_s5, 4  ;;  %s60_s17 = int_to_ptr.hbm [resolvable:$true] %s59_s17 }
   0x9   :  { %s46_s14 = sshll.u32 %s363_s1, 4  ;;  %s364_s18 = smov 128   ;;  %s47_s14 = int_to_ptr.vmem [resolvable:$true] %s46_s14 }
   0xa   :  { %s365_s0 = smov 8   ;;  %s366_s19 = smov [#allocation8]  }
   0xb   :  { %52 = dma.hbm_to_vmem [thread:$0]  %s45_s13, 2048, %s47_s14, [#allocation6], %s364_s18, %s364_s18, %s365_s0  }
   0xc   :  { %s61_s20 = sshll.u32 %s366_s19, 4  ;;  %s62_s20 = int_to_ptr.vmem [resolvable:$true] %s61_s20 }
   0xd   :  { %67 = dma.hbm_to_vmem [thread:$0]  %s60_s17, 2048, %s62_s20, [#allocation9], %s364_s18, %s364_s18, %s365_s0  }
   0xe   :  { %353 = dma.done.wait [#allocation3], 64  }
   0xf   :  { %354 = vsyncadd [#allocation3], 4294967232 }
  0x10   :  { %355 = dma.done.wait [#allocation6], 2176  }
  0x11   :  { %356 = vsyncadd [#allocation6], 4294965120 }
  0x12   :  { %357 = dma.done.wait [#allocation9], 2048  }
  0x13   :  { %358 = vsyncadd [#allocation9], 4294965248  ;;  %vm92_vm0 = vcmask 64512   ;;  %v87_v0 = vld [vmem:[#allocation5] sm:$0xff]  ;;  %v86_v1 = vld [vmem:[#allocation2] sm:$0xf] }
  0x14   :  { %v132_v2 = vld [vmem:[#allocation7 + $0x78] sm:$0xff]  ;;  %111 = vmatpush.msra.mxu0 %v87_v0  ;;  %v131_v3 = vld [vmem:[#allocation7 + $0x70] sm:$0xff]  ;;  %v130_v4 = vld [vmem:[#allocation7 + $0x68] sm:$0xff]  ;;  %s367_s24 = smov [#allocation10]   ;;  %s206_s28 = sshll.u32 %s439_s7, 4  ;;  %s207_s28 = int_to_ptr.hbm [resolvable:$true] %s206_s28 }
  0x15   :  { %137 = vmatpush.msra.mxu1 %v132_v2  ;;  %218 = vmatmul.msk.f32.vlgmr.msra.gmra.mxu0 %vm92_vm0, %v86_v1  ;;  %v129_v5 = vld [vmem:[#allocation7 + $0x60] sm:$0xff]  ;;  %v128_v6 = vld [vmem:[#allocation7 + $0x58] sm:$0xff]  ;;  %v127_v7 = vld [vmem:[#allocation7 + $0x50] sm:$0xff]  ;;  %s204_s25 = sshll.u32 %s367_s24, 4  ;;  %s205_s25 = int_to_ptr.vmem [resolvable:$true] %s204_s25 }
  0x16   :  { %v126_v8 = vld [vmem:[#allocation7 + $0x48] sm:$0xff]  ;;  %v125_v9 = vld [vmem:[#allocation7 + $0x40] sm:$0xff]  ;;  %v124_v10 = vld [vmem:[#allocation7 + $0x38] sm:$0xff] }
  0x17   :  { %138 = vmatpush.msra.mxu1 %v131_v3  ;;  %v123_v11 = vld [vmem:[#allocation7 + $0x30] sm:$0xff]  ;;  %v122_v12 = vld [vmem:[#allocation7 + $0x28] sm:$0xff]  ;;  %v121_v13 = vld [vmem:[#allocation7 + $0x20] sm:$0xff] }
  0x18   :  { %v120_v14 = vld [vmem:[#allocation7 + $0x18] sm:$0xff]  ;;  %v119_v15 = vld [vmem:[#allocation7 + $0x10] sm:$0xff]  ;;  %v118_v16 = vld [vmem:[#allocation7 + $0x8] sm:$0xff] }
  0x19   :  { %139 = vmatpush.msra.mxu1 %v130_v4  ;;  %v117_v17 = vld [vmem:[#allocation7] sm:$0xff]  ;;  %v173_v18 = vld [vmem:[#allocation8 + $0x78] sm:$0xff]  ;;  %v172_v19 = vld [vmem:[#allocation8 + $0x70] sm:$0xff] }
  0x1a   :  { %178 = vmatpush.msra.mxu2 %v173_v18  ;;  %v171_v20 = vld [vmem:[#allocation8 + $0x68] sm:$0xff]  ;;  %v170_v21 = vld [vmem:[#allocation8 + $0x60] sm:$0xff]  ;;  %v169_v22 = vld [vmem:[#allocation8 + $0x58] sm:$0xff] }
  0x1b   :  { %140 = vmatpush.msra.mxu1 %v129_v5  ;;  %v168_v23 = vld [vmem:[#allocation8 + $0x50] sm:$0xff]  ;;  %v167_v24 = vld [vmem:[#allocation8 + $0x48] sm:$0xff]  ;;  %v166_v25 = vld [vmem:[#allocation8 + $0x40] sm:$0xff] }
  0x1c   :  { %179 = vmatpush.msra.mxu2 %v172_v19  ;;  %v165_v26 = vld [vmem:[#allocation8 + $0x38] sm:$0xff]  ;;  %v164_v27 = vld [vmem:[#allocation8 + $0x30] sm:$0xff]  ;;  %v163_v28 = vld [vmem:[#allocation8 + $0x28] sm:$0xff] }
  0x1d   :  { %141 = vmatpush.msra.mxu1 %v128_v6  ;;  %v226_v29 = vld [vmem:[%s434_s2] ss:$0 sm:$0xff]  ;;  %v162_v33 = vld [vmem:[#allocation8 + $0x20] sm:$0xff]  ;;  %v161_v34 = vld [vmem:[#allocation8 + $0x18] sm:$0xff] }
  0x1e   :  { %180 = vmatpush.msra.mxu2 %v171_v20  ;;  %v160_v35 = vld [vmem:[#allocation8 + $0x10] sm:$0xff]  ;;  %v159_v36 = vld [vmem:[#allocation8 + $0x8] sm:$0xff]  ;;  %v158_v37 = vld [vmem:[#allocation8] sm:$0xff] }
  0x1f   :  { %142 = vmatpush.msra.mxu1 %v127_v7  ;;  %v227_v38 = vld [vmem:[%s436_s4] ss:$0 sm:$0xff] }
  0x20   :  { %181 = vmatpush.msra.mxu2 %v170_v21  ;;  %v228_v42 = vld [vmem:[%s438_s6] ss:$0 sm:$0xff] }
  0x21   :  { %143 = vmatpush.msra.mxu1 %v126_v8 }
  0x22   :  { %182 = vmatpush.msra.mxu2 %v169_v22 }
  0x23   :  { %144 = vmatpush.msra.mxu1 %v125_v9 }
  0x24   :  { %183 = vmatpush.msra.mxu2 %v168_v23 }
  0x25   :  { %145 = vmatpush.msra.mxu1 %v124_v10 }
  0x26   :  { %184 = vmatpush.msra.mxu2 %v167_v24 }
  0x27   :  { %146 = vmatpush.msra.mxu1 %v123_v11 }
  0x28   :  { %185 = vmatpush.msra.mxu2 %v166_v25 }
  0x29   :  { %147 = vmatpush.msra.mxu1 %v122_v12 }
  0x2a   :  { %186 = vmatpush.msra.mxu2 %v165_v26 }
  0x2b   :  { %148 = vmatpush.msra.mxu1 %v121_v13 }
  0x2c   :  { %187 = vmatpush.msra.mxu2 %v164_v27 }
  0x2d   :  { %149 = vmatpush.msra.mxu1 %v120_v14 }
  0x2e   :  { %188 = vmatpush.msra.mxu2 %v163_v28 }
  0x2f   :  { %150 = vmatpush.msra.mxu1 %v119_v15 }
  0x30   :  { %189 = vmatpush.msra.mxu2 %v162_v33 }
  0x31   :  { %151 = vmatpush.msra.mxu1 %v118_v16 }
  0x32   :  { %190 = vmatpush.msra.mxu2 %v161_v34 }
  0x33   :  { %152 = vmatpush.msra.mxu1 %v117_v17 }
  0x34   :  { %191 = vmatpush.msra.mxu2 %v160_v35 }
  0x36   :  { %192 = vmatpush.msra.mxu2 %v159_v36 }
  0x38   :  { %193 = vmatpush.msra.mxu2 %v158_v37 }
  0x92   :  { %v113_v30 = vpop.f32.mrf.mxu0 }
  0x93   :  { %v114_v31 = vadd.f32 %v226_v29, %v113_v30 }
  0x95   :  { %229 = vtanh.f32 %v114_v31 }
  0x9b   :  { %v230_v32 = vpop.eup %229 }
  0x9c   :  { %153 = vmatmul.f32.vlgmr.msra.gmra.mxu1 %v230_v32 }
 0x119   :  { %v154_v39 = vpop.f32.mrf.mxu1 }
 0x11a   :  { %v155_v40 = vadd.f32 %v227_v38, %v154_v39 }
 0x11c   :  { %231 = vtanh.f32 %v155_v40 }
 0x122   :  { %v232_v41 = vpop.eup %231 }
 0x123   :  { %194 = vmatmul.f32.vlgmr.msra.gmra.mxu2 %v232_v41 }
 0x1a6   :  { %v195_v43 = vpop.f32.mrf.mxu2 }
 0x1a7   :  { %v196_v44 = vadd.f32 %v228_v42, %v195_v43 }
 0x1a9   :  { %198 = vst [vmem:[#allocation10] sm:$0xf] %v196_v44 }
 0x1aa   :  { %209 = dma.vmem_to_hbm [thread:$0]  %s205_s25, 64, %s207_s28, [#allocation4]  }
 0x1ab   :  { %359 = dma.done.wait [#allocation4], 64  }
 0x1ac   :  { %360 = vsyncadd [#allocation4], 4294967232 }
 0x1ad   :  { %214 = vsyncpa [#allocation3], 1 }
 0x1ae   :  { %215 = vsyncpa [#allocation6], 1 }
 0x1af   :  { %216 = vsyncpa [#allocation9], 1 }
 0x1b0   :  { %217 = vsyncpa [#allocation4], 1 }

</bundles_post_ra>
